<compile_context>
chip_gen: v7x
topology: tpu7x:2x2x1
jax: 0.10.0
libtpu: 0.0.40
codegen_flags: <defaults>
</compile_context>

<pallas_src>
import functools

import jax
import jax.numpy as jnp
from jax.experimental import pallas as pl
from jax.experimental.pallas import tpu as pltpu


def _residual_kernel_full(x_ref, w_ref, b_ref, o_ref):
    """TN == H: one (TM, H) x block serves both the matmul and the residual."""
    x = x_ref[...]                                                  # (TM, H)
    y = jnp.dot(x.astype(jnp.bfloat16), w_ref[...],                 # MXU, bf16 in, f32 acc
                preferred_element_type=jnp.float32)                 # (TM, H) f32
    y = y + b_ref[...].astype(jnp.float32)                          # broadcast (1, H)
    y = jax.nn.gelu(y)                                              # fn(x); tanh approx -> EUP
    # TODO(synk): torch.nn.GELU defaults to erf; pass approximate=False here and
    # in the reference if exact torch parity is required.
    o_ref[...] = (y + x.astype(jnp.float32)).astype(o_ref.dtype)    # fn(x) + x, one downcast


def _residual_kernel_ntile(x_ref, xres_ref, w_ref, b_ref, o_ref):
    """TN < H: weight tiled along N; xres_ref is the (TM, TN) residual slice."""
    y = jnp.dot(x_ref[...].astype(jnp.bfloat16), w_ref[...],
                preferred_element_type=jnp.float32)                 # (TM, TN) f32
    y = y + b_ref[...].astype(jnp.float32)
    y = jax.nn.gelu(y)
    o_ref[...] = (y + xres_ref[...].astype(jnp.float32)).astype(o_ref.dtype)


def _round_up(n, m):
    return ((n + m - 1) // m) * m


def _choose_tm(M, H, itemsize, target_bytes=2 << 20, max_tm=4096):
    """Row tile: ~2 MiB of x per tile, sublane-aligned, >=2 grid steps if possible."""
    rows = max(8, target_bytes // (H * itemsize))
    tm = min(max_tm, _round_up(int(rows), 8))
    tm = min(tm, _round_up(M, 8))
    if M > 8:  # keep at least 2 grid steps so v7x's second TensorCore has work
        tm = min(tm, _round_up(pl.cdiv(M, 2), 8))
    return max(int(tm), 8)


def residual_forward(x, w, b, *, tm=None, tn=None):
    """x: (B, S, H); w: (H, H); b: (H,). Returns gelu(x @ w + b) + x."""
    B, S, H = x.shape
    M = B * S
    x2d = x.reshape(M, H)
    # In a real model the weight would already be stored bf16; cast here so the
    # weight DMA and its VMEM footprint are halved.
    w_bf16 = w.astype(jnp.bfloat16)
    b2d = b.reshape(1, H).astype(jnp.float32)

    TM = tm if tm is not None else _choose_tm(M, H, x.dtype.itemsize)
    if tn is None:
        # Tile the weight along N only when a full (H, H) bf16 weight is a VMEM
        # problem; when tiling, a 256-multiple TN keeps the 2x256x256 MXUs fed.
        TN = H if (H * H * 2) <= (8 << 20) else 512
    else:
        TN = tn
    assert H % TN == 0 and (TN % 128 == 0 or TN == H), "TN must divide H, lane-aligned"

    grid = (pl.cdiv(M, TM), H // TN)
    n_tiled = TN != H

    if n_tiled:
        kernel = _residual_kernel_ntile
        in_specs = [
            pl.BlockSpec((TM, H), lambda i, j: (i, 0)),    # x for the matmul (resident per i)
            pl.BlockSpec((TM, TN), lambda i, j: (i, j)),   # x slice for the residual add
            pl.BlockSpec((H, TN), lambda i, j: (0, j)),    # weight N-tile (double-buffered)
            pl.BlockSpec((1, TN), lambda i, j: (0, j)),    # bias N-tile
        ]
        operands = (x2d, x2d, w_bf16, b2d)
        w_bufs = 2
    else:
        kernel = _residual_kernel_full
        single = pl.Buffered(buffer_count=1)               # constant block index: nothing to double-buffer
        in_specs = [
            pl.BlockSpec((TM, H), lambda i, j: (i, 0)),    # x row tile (pipelined)
            pl.BlockSpec((H, H), lambda i, j: (0, 0), pipeline_mode=single),   # VMEM-resident W
            pl.BlockSpec((1, H), lambda i, j: (0, 0), pipeline_mode=single),   # VMEM-resident b
        ]
        operands = (x2d, w_bf16, b2d)
        w_bufs = 1

    itemsize = x.dtype.itemsize
    vmem_need = (
        2 * TM * H * itemsize                      # x tiles (double-buffered)
        + 2 * TM * TN * itemsize                   # out tiles (double-buffered)
        + (2 * TM * TN * itemsize if n_tiled else 0)   # residual slice tiles
        + w_bufs * H * TN * 2                      # bf16 weight tile(s)
        + w_bufs * TN * 4                          # bias
    )
    vmem_limit = int(min(max(2 * vmem_need, 32 << 20), 96 << 20))

    cost = pl.CostEstimate(
        flops=2 * M * H * H,
        transcendentals=M * H,
        bytes_accessed=2 * M * H * itemsize + H * H * 2 + H * 4,
    )

    out2d = pl.pallas_call(
        kernel,
        out_shape=jax.ShapeDtypeStruct((M, H), x.dtype),
        grid=grid,
        in_specs=in_specs,
        out_specs=pl.BlockSpec((TM, TN), lambda i, j: (i, j)),
        compiler_params=pltpu.CompilerParams(
            # Both axes fully independent -> shard across TCs on v7x megacore.
            dimension_semantics=("parallel", "parallel"),
            vmem_limit_bytes=vmem_limit,
        ),
        cost_estimate=cost,
    )(*operands)

    return out2d.reshape(B, S, H)


def residual_reference(x, w, b):
    """Pure-JAX reference matching the kernel's bf16-operand MXU matmul."""
    B, S, H = x.shape
    x2 = x.reshape(-1, H)
    y = jnp.dot(x2.astype(jnp.bfloat16), w.astype(jnp.bfloat16),
                preferred_element_type=jnp.float32)
    y = jax.nn.gelu(y + b.astype(jnp.float32))
    return (y + x2.astype(jnp.float32)).astype(x.dtype).reshape(B, S, H)


def _make_inputs(key, B, S, H):
    kx, kw, kb = jax.random.split(key, 3)
    x = jax.random.normal(kx, (B, S, H), dtype=jnp.float32)
    w = jax.random.normal(kw, (H, H), dtype=jnp.float32) * (1.0 / jnp.sqrt(H))
    b = jax.random.normal(kb, (H,), dtype=jnp.float32) * 0.01
    return x, w, b


if __name__ == "__main__":
    tol = dict(atol=2e-2, rtol=2e-2)  # bf16 MXU operands

    # 1) Small sanity shape: 2-step row grid, weight fully VMEM-resident.
    x, w, b = _make_inputs(jax.random.PRNGKey(0), 2, 8, 128)
    out = jax.block_until_ready(residual_forward(x, w, b))
    assert out.shape == x.shape
    assert jnp.allclose(out, residual_reference(x, w, b), **tol), "mismatch (small)"

    # 2) M = 1000 rows (not a multiple of TM) -> exercises the masked partial
    #    edge block (no host-side pad/slice).
    x, w, b = _make_inputs(jax.random.PRNGKey(1), 2, 500, 256)
    out = jax.block_until_ready(residual_forward(x, w, b))
    assert out.shape == x.shape
    assert jnp.allclose(out, residual_reference(x, w, b), **tol), "mismatch (ragged M)"

    # 3) Forced N tiling (TN=128 < H=256) -> exercises the weight-tiled path
    #    with the statically-indexed residual slice.
    x, w, b = _make_inputs(jax.random.PRNGKey(2), 2, 32, 256)
    out = jax.block_until_ready(residual_forward(x, w, b, tn=128))
    assert out.shape == x.shape
    assert jnp.allclose(out, residual_reference(x, w, b), **tol), "mismatch (N-tiled)"

    print("KERNEL_OK")
</pallas_src>

<mosaic_0001>
module attributes {stable_mosaic.version = 11 : i64} {
  func.func @_residual_kernel_full(%arg0: i32, %arg1: i32, %arg2: memref<8x128xf32, #tpu.memory_space<vmem>>, %arg3: memref<128x128xbf16, #tpu.memory_space<vmem>>, %arg4: memref<1x128xf32, #tpu.memory_space<vmem>>, %arg5: memref<8x128xf32, #tpu.memory_space<vmem>>) attributes {dimension_semantics = [#tpu.dimension_semantics<parallel>, #tpu.dimension_semantics<parallel>], iteration_bounds = array<i64: 2, 1>, scalar_prefetch = 0 : i64, scratch_operands = 0 : i64, tpu.core_type = #tpu.core_type<tc>, window_params = [{transform_indices = @transform_0, window_bounds = array<i64: 8, 128>}, {pipeline_mode = #tpu.pipeline_mode<synchronous>, transform_indices = @transform_1, window_bounds = array<i64: 128, 128>}, {pipeline_mode = #tpu.pipeline_mode<synchronous>, transform_indices = @transform_2, window_bounds = array<i64: 1, 128>}, {transform_indices = @transform_3, window_bounds = array<i64: 8, 128>}]} {
    %c0 = arith.constant 0 : index
    %c0_0 = arith.constant 0 : index
    %0 = vector.load %arg2[%c0, %c0_0] : memref<8x128xf32, #tpu.memory_space<vmem>>, vector<8x128xf32>
    %1 = arith.truncf %0 : vector<8x128xf32> to vector<8x128xbf16>
    %c0_1 = arith.constant 0 : index
    %c0_2 = arith.constant 0 : index
    %2 = vector.load %arg3[%c0_1, %c0_2] : memref<128x128xbf16, #tpu.memory_space<vmem>>, vector<128x128xbf16>
    %cst = arith.constant dense<0.000000e+00> : vector<8x128xf32>
    %3 = tpu.matmul %1, %2, %cst {dimension_numbers = #tpu.dot_dimension_numbers<[1], [0], [0], [1], [0, 0, 1, 1], [], []>} : vector<8x128xbf16>, vector<128x128xbf16>, vector<8x128xf32> -> vector<8x128xf32>
    %c0_3 = arith.constant 0 : index
    %c0_4 = arith.constant 0 : index
    %4 = vector.load %arg4[%c0_3, %c0_4] : memref<1x128xf32, #tpu.memory_space<vmem>>, vector<1x128xf32>
    %5 = vector.broadcast %4 : vector<1x128xf32> to vector<8x128xf32>
    %6 = arith.addf %3, %5 : vector<8x128xf32>
    %7 = arith.mulf %6, %6 : vector<8x128xf32>
    %8 = arith.mulf %6, %7 : vector<8x128xf32>
    %cst_5 = arith.constant 4.471500e-02 : f32
    %9 = vector.broadcast %cst_5 : f32 to vector<8x128xf32>
    %10 = arith.mulf %9, %8 : vector<8x128xf32>
    %11 = arith.addf %6, %10 : vector<8x128xf32>
    %cst_6 = arith.constant 0.797884583 : f32
    %12 = vector.broadcast %cst_6 : f32 to vector<8x128xf32>
    %13 = arith.mulf %12, %11 : vector<8x128xf32>
    %14 = math.tanh %13 : vector<8x128xf32>
    %cst_7 = arith.constant 1.000000e+00 : f32
    %15 = vector.broadcast %cst_7 : f32 to vector<8x128xf32>
    %16 = arith.addf %15, %14 : vector<8x128xf32>
    %cst_8 = arith.constant 5.000000e-01 : f32
    %17 = vector.broadcast %cst_8 : f32 to vector<8x128xf32>
    %18 = arith.mulf %17, %16 : vector<8x128xf32>
    %19 = arith.mulf %6, %18 : vector<8x128xf32>
    %20 = arith.addf %19, %0 : vector<8x128xf32>
    %c0_9 = arith.constant 0 : index
    %c0_10 = arith.constant 0 : index
    %21 = vector.load %arg5[%c0_9, %c0_10] : memref<8x128xf32, #tpu.memory_space<vmem>>, vector<8x128xf32>
    tpu.vector_store %arg5[%c0_9, %c0_10], %20 {strides = array<i32>} : memref<8x128xf32, #tpu.memory_space<vmem>>, vector<8x128xf32>,
    return
  }
  func.func @transform_0(%arg0: i32, %arg1: i32) -> (i32, i32) {
    %c0_i32 = arith.constant 0 : i32
    %c0_i32_0 = arith.constant 0 : i32
    return %arg0, %c0_i32 : i32, i32
  }
  func.func @transform_1(%arg0: i32, %arg1: i32) -> (i32, i32) {
    %c0_i32 = arith.constant 0 : i32
    %c0_i32_0 = arith.constant 0 : i32
    %c0_i32_1 = arith.constant 0 : i32
    return %c0_i32, %c0_i32_0 : i32, i32
  }
  func.func @transform_2(%arg0: i32, %arg1: i32) -> (i32, i32) {
    %c0_i32 = arith.constant 0 : i32
    %c0_i32_0 = arith.constant 0 : i32
    %c0_i32_1 = arith.constant 0 : i32
    return %c0_i32, %c0_i32_0 : i32, i32
  }
  func.func @transform_3(%arg0: i32, %arg1: i32) -> (i32, i32) {
    %c0_i32 = arith.constant 0 : i32
    return %arg0, %arg1 : i32, i32
  }
}

</mosaic_0001>

<bundles_post_ra>
// kernel: tpu_custom_call.1
= control target key start
LH: loop header
LB: loop body
LE: loop exit
PB: predicated region body
PF: predicated region fallthrough
CT: control target
= control target key end

     0   :  { %8 = vsyncpa [#allocation3], 0  ;;  %s978_s0 = inlined_call_operand.hbm [shape: f32[16,128], index: 0, kind: input, shape index: {}]   ;;  %s979_s1 = inlined_call_operand.hbm [shape: bf16[128,128], index: 1, kind: input, shape index: {}]   ;;  %s980_s2 = inlined_call_operand.vmem [shape: f32[1,128], index: 2, kind: input, shape index: {}]   ;;  %s981_s3 = inlined_call_operand.hbm [shape: f32[16,128], index: 3, kind: output, shape index: {}]  }
   0x1   :  { %10 = vsyncpa [#allocation3 + $0x1], 0 }
   0x2   :  { %11 = vsyncpa [#allocation6], 0 }
   0x3   :  { %12 = vsyncpa [#allocation4], 0 }
   0x4   :  { %14 = vsyncpa [#allocation4 + $0x1], 0  ;;  %s757_s12 = smov 0   ;;  %s759_s13 = smov 0  }
   0x5   :  { %s761_s14 = smov 0   ;;  %s763_s15 = smov 0  }
   0x6   :  { %s765_s16 = smov 0   ;;  %s767_s17 = smov 0  }
   0x7 LB: > { %s444_s18 = sadd.s32 4294967295, %s728_s17   ;;  %s445_s19 = sadd.s32 4294967294, %s728_s17   ;;  %s728_s17 = sphi %s767_s17, %s20_s17   ;;  %s724_s16 = sphi %s765_s16, %s1005_s16   ;;  %s720_s15 = sphi %s763_s15, %s1004_s15   ;;  %s716_s14 = sphi %s761_s14, %s1003_s14   ;;  %s712_s13 = sphi %s759_s13, %s1002_s13   ;;  %s708_s12 = sphi %s757_s12, %s1001_s12  }
   0x8   : > { %p52_p0 = scmp.ne.s32.totalorder %s712_s13, %s708_s12  ;;  %p791_p1 = scmp.eq.s32.totalorder %s444_s18, 0 }
   0x9   : > { %p795_p2 = scmp.eq.s32.totalorder %s444_s18, 1  ;;  %p126_p3 = scmp.eq.s32.totalorder %s445_s19, 1 }
   0xa   : > { %s986_s20 = scalar_select %p791_p1, 1, 0 }
   0xb   : > { %s987_s21 = scalar_select %p795_p2, 1, 0 }
   0xc   : > { %p801_p4 = por %p791_p1, %p52_p0  ;;  %p446_p5 = scmp.ge.s32.totalorder %s728_s17, 1 }
   0xd   : > { %p806_p6 = por %p126_p3, %p52_p0  ;;  %p133_p7 = scmp.lt.s32.totalorder %s728_s17, 3 }
   0xe   : > { %s988_s22 = scalar_select %p801_p4, 1, 0 }
   0xf   : > { %s989_s23 = scalar_select %p806_p6, 1, 0 }
  0x10   : > { %p811_p8 = pnand %p446_p5, %p133_p7  ;;  %s730_s25 = smov [#allocation5]  }
  0x11   : > { %s145_s26 = sshll.u32 %s730_s25, 4  ;;  %s32_s28 = sadd.s32 1, %s724_s16  ;;  %s146_s26 = int_to_ptr.vmem [resolvable:$true] %s145_s26 }
  0x12   : > { %s990_s24 = scalar_select %p811_p8, 1, 0 }
  0x13   : > { %p505_p9 = pneg %p811_p8  ;;  %s584_s4 = scalar_lea.hbm %s979_s1, 1024 }
  0x14   : > { %p585_p12 = scmp.ne.s32.totalorder %s979_s1, %s584_s4  ;;  %p591_p5 = scmp.lt.u32.totalorder %s584_s4, %s979_s1 }
  0x15   : > { %p820_p11 = pnand %p505_p9, %p791_p1 }
  0x17   : > { %p586_p13 = pneg %p820_p11 }
  0x19   : > { %p587_p0 = pnand %p586_p13, %p585_p12 }
  0x1b   : > { %p588_p3 = pneg %p587_p0 }
  0x1d   : > { %p593_p7 = pnand %p591_p5, %p588_p3 }
  0x1f   : > { %596 = shalt.err (!%p593_p7)
}
  0x20   : > { %s597_s9 = scalar_lea.vmem %s146_s26, 1024  ;;  %p605_p1 = scmp.lt.s32.totalorder %s146_s26, %s146_s26 }
  0x21   : > { %p598_p9 = scmp.ne.s32.totalorder %s146_s26, %s597_s9  ;;  %p606_p4 = scmp.lt.s32.totalorder %s597_s9, %s597_s9 }
  0x23   : > { %p600_p10 = pnand %p598_p9, %p586_p13  ;;  %p607_p8 = por %p606_p4, %p605_p1 }
  0x25   : > { %p601_p6 = pneg %p600_p10 }
  0x27   : > { %p608_p2 = pnand %p607_p8, %p601_p6 }
  0x29   : > { %611 = shalt.err (!%p608_p2)
}
  0x2a   : > { %s731_s10 = smov 64   ;;  %s732_s11 = smov 4  }
  0x2b   : > { %508 = dma.hbm_to_vmem [thread:$0]  (!%p820_p11), %s979_s1, 1024, %s146_s26, [#allocation6], %s731_s10, %s731_s10, %s732_s11  }
  0x2c   : > { %p34_p1 = scmp.ge.s32.totalorder %s32_s28, 2  ;;  %s39_s25 = sadd.s32 1, %s716_s14 }
  0x2d   : > { %p46_p2 = scmp.ne.s32.totalorder %s716_s14, %s712_s13  ;;  %p47_p4 = scmp.eq.s32.totalorder %s728_s17, 0 }
  0x2e   : > { %s1007_s28 = smov (%p34_p1, %s32_s28), 0  ;;  %p993_p8 = scmp.ne.s32.totalorder %s987_s21, 0 }
  0x2f   : > { %p847_p6 = por %p47_p4, %p46_p2  ;;  %s36_s27 = ssub.s32 %s724_s16, %s1007_s28 }
  0x30   : > { %p853_p10 = por %p993_p8, %p46_p2  ;;  %p518_p12 = scmp.lt.s32.totalorder %s728_s17, 2 }
  0x31   : > { %p37_p11 = scmp.eq.s32.totalorder %s36_s27, 0  ;;  %s162_s26 = sand.u32 1, %s716_s14  }
  0x32   : > { %s449_s4 = sshll.u32 %s162_s26, 3  ;;  %s450_s6 = sshll.u32 %s724_s16, 7 }
  0x33   : > { %s862_s5 = scalar_select %p37_p11, %s716_s14, %s39_s25  }
  0x34   : > { %s868_s9 = scalar_lea.hbm %s978_s0, %s450_s6  ;;  %s166_s21 = scalar_lea.vmem [#allocation2], %s449_s4 }
  0x35   : > { %s173_s10 = sshll.u32 %s166_s21, 4  ;;  %p874_p13 = pnand %p518_p12, %p847_p6  ;;  %s870_s10 = int_to_ptr.vmem [resolvable:$true] %s173_s10 }
  0x36   : > { %s163_s18 = scalar_lea.sflag [#allocation3], %s162_s26  ;;  %s612_s19 = scalar_lea.hbm %s868_s9, 128 }
  0x37   : > { %p613_p0 = scmp.ne.s32.totalorder %s868_s9, %s612_s19  ;;  %p614_p3 = pneg %p874_p13 }
  0x38   : > { %s617_s4 = scalar_lea.hbm %s978_s0, 256  ;;  %p618_p9 = scmp.lt.u32.totalorder %s868_s9, %s978_s0 }
  0x39   : > { %p615_p5 = pnand %p614_p3, %p613_p0  ;;  %p619_p1 = scmp.lt.u32.totalorder %s617_s4, %s612_s19 }
  0x3a   : > { %p621_p4 = scmp.lt.u32.totalorder %s612_s19, %s868_s9 }
  0x3b   : > { %p616_p7 = pneg %p615_p5  ;;  %p620_p2 = por %p619_p1, %p618_p9 }
  0x3d   : > { %p622_p6 = por %p621_p4, %p620_p2 }
  0x3f   : > { %p623_p8 = pnand %p622_p6, %p616_p7 }
  0x41   : > { %626 = shalt.err (!%p623_p8)
}
  0x42   : > { %s627_s26 = scalar_lea.vmem %s870_s10, 128  ;;  %s733_s7 = smov [#allocation2]  }
  0x43   : > { %p628_p12 = scmp.ne.s32.totalorder %s870_s10, %s627_s26  ;;  %s632_s8 = sshll.u32 %s733_s7, 4  ;;  %s633_s8 = int_to_ptr.vmem [resolvable:$false] %s632_s8 }
  0x44   : > { %s634_s21 = scalar_lea.vmem %s633_s8, 256  ;;  %p635_p5 = scmp.lt.s32.totalorder %s870_s10, %s633_s8 }
  0x45   : > { %p630_p11 = pnand %p628_p12, %p614_p3  ;;  %p636_p9 = scmp.lt.s32.totalorder %s634_s21, %s627_s26 }
  0x47   : > { %p631_p0 = pneg %p630_p11  ;;  %p637_p1 = por %p636_p9, %p635_p5 }
  0x49   : > { %p638_p2 = pnand %p637_p1, %p631_p0 }
  0x4b   : > { %641 = shalt.err (!%p638_p2)
}
  0x4c   : > { %512 = dma.hbm_to_vmem [thread:$0]  (!%p874_p13), %s868_s9, 128, %s870_s10, %s163_s18  }
  0x4d   : > { %p996_p7 = scmp.ne.s32.totalorder %s990_s24, 0 }
  0x4e   : > { %s906_s19 = sand.u32 (!%p996_p7), 1, %s712_s13   ;;  %p997_p3 = scmp.ne.s32.totalorder (!%p996_p7), %s988_s22, 0 }
  0x4f   : > { %182 = sbr.rel (%p996_p7) target bundleno = 380 (0x17c), region = 32  ;;  %s452_s25 = sshll.u32 (!%p996_p7), %s906_s19, 3 }
  0x50   : > { %s185_s27 = scalar_lea.sflag (!%p996_p7), [#allocation3], %s906_s19  ;;  %s188_s4 = scalar_lea.vmem (!%p996_p7), [#allocation2], %s452_s25 }
  0x56   : > { %695 = dma.done.wait (%p997_p3), %s185_s27, 128  }
  0x57   : > { %697 = vsyncadd (%p997_p3), %s185_s27, 4294967168  ;;  %p998_p13 = scmp.ne.s32.totalorder %s986_s20, 0 }
  0x59   : > { %699 = dma.done.wait (%p998_p13), [#allocation6], 1024  }
  0x5a   : > { %701 = vsyncadd (%p998_p13), [#allocation6], 4294966272  ;;  %v734_v0 = vmov 0.0   ;;  %vm735_vm0 = vmmov 0   ;;  %v574_v1 = vld [vmem:[#allocation5] sm:$0xff]   ;;  %v575_v2 = vld [vmem:[#allocation5 + $0x8] sm:$0xff]  }
  0x5b   : > { %477 = vmatprep.subr.bf16.mxu0 %v734_v0  ;;  %493 = vmatprep.mubr.msk.bf16.mxu0 %vm735_vm0, %v734_v0  ;;  %v576_v3 = vld [vmem:[#allocation5 + $0x10] sm:$0xff]   ;;  %v577_v4 = vld [vmem:[#allocation5 + $0x18] sm:$0xff]   ;;  %v578_v5 = vld [vmem:[#allocation5 + $0x20] sm:$0xff]   ;;  %s465_s24 = sshll.u32 %s720_s15, 7  ;;  %s214_s9 = scalar_lea.vmem [#allocation7], %s452_s25 }
  0x5c   : > { %478 = vmatpush3.bf16.msra.mxu0 %v574_v1  ;;  %v579_v6 = vld [vmem:[#allocation5 + $0x28] sm:$0xff]   ;;  %v580_v7 = vld [vmem:[#allocation5 + $0x30] sm:$0xff]   ;;  %v581_v8 = vld [vmem:[#allocation5 + $0x38] sm:$0xff]   ;;  %s355_s10 = sshll.u32 %s214_s9, 4  ;;  %s929_s29 = scalar_lea.hbm %s981_s3, %s465_s24  ;;  %s931_s10 = int_to_ptr.vmem [resolvable:$true] %s355_s10 }
  0x5d   : > { %479 = vmatprep.subr.bf16.mxu0 %v734_v0  ;;  %v216_v9 = vld [vmem:[%s188_s4] sm:$0xff]  ;;  %s341_s6 = scalar_lea.sflag [#allocation4], %s906_s19  ;;  %s642_s26 = scalar_lea.vmem %s931_s10, 128 }
  0x5e   : > { %v217_v10 = vpack.c.bf16 %v216_v9, %v216_v9  ;;  %v455_v11 = vld [vmem:[%s980_s2] ss:$0 sm:$0xff]  ;;  %p643_p4 = scmp.ne.s32.totalorder %s931_s10, %s642_s26  ;;  %s736_s15 = smov [#allocation7]  }
  0x5f   : > { %s646_s7 = sshll.u32 %s736_s15, 4  ;;  %s647_s7 = int_to_ptr.vmem [resolvable:$false] %s646_s7 }
  0x60   : > { %480 = vmatpush3.bf16.msra.mxu0 %v575_v2  ;;  %p644_p6 = pnand %p643_p4, %p853_p10  ;;  %s648_s8 = scalar_lea.vmem %s647_s7, 256 }
  0x61   : > { %481 = vmatprep.subr.bf16.mxu0 %v734_v0  ;;  %p649_p12 = scmp.lt.s32.totalorder %s931_s10, %s647_s7  ;;  %p650_p11 = scmp.lt.s32.totalorder %s648_s8, %s642_s26 }
  0x62   : > { %p645_p8 = pneg %p644_p6 }
  0x63   : > { %p651_p0 = por %p650_p11, %p649_p12 }
  0x64   : > { %482 = vmatpush3.bf16.msra.mxu0 %v576_v3 }
  0x65   : > { %483 = vmatprep.subr.bf16.mxu0 %v734_v0  ;;  %p652_p5 = pnand %p651_p0, %p645_p8 }
  0x68   : > { %484 = vmatpush3.bf16.msra.mxu0 %v577_v4 }
  0x69   : > { %485 = vmatprep.subr.bf16.mxu0 %v734_v0 }
  0x6c   : > { %486 = vmatpush3.bf16.msra.mxu0 %v578_v5 }
  0x6d   : > { %487 = vmatprep.subr.bf16.mxu0 %v734_v0 }
  0x70   : > { %488 = vmatpush3.bf16.msra.mxu0 %v579_v6 }
  0x71   : > { %489 = vmatprep.subr.bf16.mxu0 %v734_v0 }
  0x74   : > { %490 = vmatpush3.bf16.msra.mxu0 %v580_v7 }
  0x75   : > { %491 = vmatprep.subr.bf16.mxu0 %v734_v0 }
  0x78   : > { %492 = vmatpush3.bf16.msra.mxu0 %v581_v8 }
  0x7b   : > { %494 = vmatmul.mubr.bf16.vlgmr.msra.gmra.mrb[0].mxu0 %v217_v10 }
 0x14e   : > { %v323_v12 = vpop.f32.mrb[0].mxu0 }
 0x14f   : > { %v324_v13 = vadd.f32 %v455_v11, %v323_v12  ;;  %v495_v14 = vpop.f32.mrb[1].mxu0 }
 0x150   : > { %v326_v15 = vpop.f32.mrb[2].mxu0 }
 0x151   : > { %v329_v16 = vmul.f32 %v324_v13, %v324_v13  ;;  %v496_v17 = vpop.f32.mrb[3].mxu0 }
 0x153   : > { %v330_v18 = vmul.f32 %v329_v16, %v324_v13 }
 0x155   : > { %v331_v19 = vmul.f32 0.044715, %v330_v18 }
 0x157   : > { %v332_v20 = vadd.f32 %v331_v19, %v324_v13 }
 0x159   : > { %v333_v21 = vmul.f32 0.7978846, %v332_v20 }
 0x15b   : > { %582 = vtanh.f32 %v333_v21 }
 0x165   : > { %v583_v22 = vpop.eup %582 }
 0x166   : > { %v335_v23 = vadd.f32 1.0, %v583_v22 }
 0x168   : > { %v336_v24 = vmul.f32 0.5, %v335_v23 }
 0x16a   : > { %v337_v25 = vmul.f32 %v336_v24, %v324_v13 }
 0x16c   : > { %v338_v26 = vadd.f32 %v337_v25, %v216_v9 }
 0x16e   : > { %339 = vst [vmem:[%s214_s9] sm:$0xff] %v338_v26 }
 0x16f   : > { %655 = shalt.err (!%p652_p5)
}
 0x170   : > { %s656_s21 = scalar_lea.hbm %s929_s29, 128  ;;  %s660_s27 = scalar_lea.hbm %s981_s3, 256 }
 0x171   : > { %p657_p9 = scmp.ne.s32.totalorder %s929_s29, %s656_s21  ;;  %p661_p7 = scmp.lt.u32.totalorder %s929_s29, %s981_s3 }
 0x172   : > { %p662_p3 = scmp.lt.u32.totalorder %s660_s27, %s656_s21  ;;  %p664_p4 = scmp.lt.u32.totalorder %s656_s21, %s929_s29 }
 0x173   : > { %p658_p1 = pnand %p657_p9, %p853_p10 }
 0x174   : > { %p663_p13 = por %p662_p3, %p661_p7 }
 0x175   : > { %p659_p2 = pneg %p658_p1 }
 0x176   : > { %p665_p6 = por %p664_p4, %p663_p13 }
 0x178   : > { %p666_p8 = pnand %p665_p6, %p659_p2 }
 0x17a   : > { %669 = shalt.err (!%p666_p8)
}
 0x17b   : > { %503 = dma.vmem_to_hbm [thread:$0]  (%p853_p10), %s931_s10, 128, %s929_s29, %s341_s6  }
 0x17c PF: > { %s367_s22 = sand.u32 1, %s708_s12   ;;  %p999_p12 = scmp.ne.s32.totalorder %s989_s23, 0 }
 0x17d   : > { %p1000_p11 = scmp.ge.s32.totalorder %s728_s17, 2  ;;  %s368_s24 = scalar_lea.sflag [#allocation4], %s367_s22 }
 0x17f   : > { %p514_p0 = pnand %p1000_p11, %p999_p12 }
 0x181   : > { %703 = dma.done.wait (!%p514_p0), %s368_s24, 128  }
 0x182   : > { %705 = vsyncadd (!%p514_p0), %s368_s24, 4294967168  ;;  %s20_s17 = sadd.s32 1, %s728_s17   ;;  %s1001_s12 = smov %s712_s13 }
 0x183   : > { %p17_p5 = scmp.ge.s32.totalorder %s20_s17, 4   ;;  %s1002_s13 = smov %s716_s14 }
 0x184   : > { %s1003_s14 = smov %s862_s5  ;;  %s1004_s15 = smov %s724_s16 }
 0x185   : > { %s1005_s16 = smov %s1007_s28  ;;  %19 = sbr.rel (!%p17_p5) target bundleno = 7 (0x7), region = 81 }
 0x18c   :  { %373 = vsyncpa [#allocation3], 1 }
 0x18d   :  { %375 = vsyncpa [#allocation3 + $0x1], 1 }
 0x18e   :  { %376 = vsyncpa [#allocation6], 1 }
 0x18f   :  { %377 = vsyncpa [#allocation4], 1 }
 0x190   :  { %379 = vsyncpa [#allocation4 + $0x1], 1 }

</bundles_post_ra>
